<compile_context>
chip_gen: v5e
topology: v5e:2x2
jax: 0.10.0
libtpu: 0.0.40
codegen_flags: <defaults>
</compile_context>

<pallas_src>
import functools

import jax
import jax.numpy as jnp
from jax.experimental import pallas as pl
from jax.experimental.pallas import tpu as pltpu

LANES = 128


def _chip_config():
    """Per-generation tuning: (n_chunks, max_block_bytes, vmem_limit_bytes)."""
    kind = ""
    try:
        kind = jax.devices()[0].device_kind.lower()
    except Exception:  # defensive: fall through to conservative defaults
        pass
    if "v7" in kind:
        # v7x: 2 TensorCores/chip, 64 MiB physical VMEM per TC.
        return 2, 8 << 20, 32 << 20
    if "v5" in kind or "v6" in kind:
        # v5e/v6e (and v4/v5p): single exposed core, 128 MiB physical VMEM.
        return 1, 16 << 20, 64 << 20
    # Unknown part: conservative settings that fit every generation.
    return 1, 8 << 20, 32 << 20


def _sum_relu_kernel(x_ref, o_ref, *, block_rows, blocks_per_chunk, total_rows,
                     sub, need_mask):
    i = pl.program_id(1)  # block within chunk (reduction axis)

    @pl.when(i == 0)
    def _init():
        o_ref[...] = jnp.zeros_like(o_ref)

    def accumulate(x):
        # `sub` independent (8, 128) f32 accumulators (pure VPU adds) break the
        # long serial add chain so the vector loads can saturate HBM.
        o_ref[...] += x.reshape(block_rows // (8 * sub), sub, 8, LANES).sum(axis=0)

    def plain():
        accumulate(jnp.maximum(x_ref[...], 0).astype(jnp.float32))

    if not need_mask:
        plain()
    else:
        # Only the boundary block pays for the row mask; interior blocks take
        # the plain relu + accumulate path.
        start = (pl.program_id(0) * blocks_per_chunk + i) * block_rows
        interior = start + block_rows <= total_rows

        @pl.when(interior)
        def _interior():
            plain()

        @pl.when(jnp.logical_not(interior))
        def _boundary():
            x = jnp.maximum(x_ref[...], 0).astype(jnp.float32)
            row = start + jax.lax.broadcasted_iota(jnp.int32, (block_rows, 1), 0)
            accumulate(jnp.where(row < total_rows, x, 0.0))


def toy_model_forward(x: jax.Array, *, _max_block_bytes=None) -> jax.Array:
    """Equivalent of torch.sum(F.relu(input)).unsqueeze(0) -> shape (1,)."""
    out_dtype = x.dtype if jnp.issubdtype(x.dtype, jnp.floating) else jnp.float32

    flat = x.reshape(-1)          # free bitcast for contiguous input
    total = flat.size
    rows = total // LANES
    rem = total - rows * LANES

    itemsize = jnp.dtype(x.dtype).itemsize
    g = 8 * max(1, 4 // itemsize)   # sublane row granularity of the input dtype

    tail_sum = jnp.zeros((), jnp.float32)
    if rem:
        # TODO(synk): for total % 128 != 0 the lane-aligned prefix below is a
        # JAX-level slice (one extra HBM pass); a raw-HBM manual-DMA path would
        # avoid it but is not worth the layout risk for this toy op.
        tail_sum = jnp.sum(jnp.maximum(flat[rows * LANES:], 0).astype(jnp.float32))
    if rows < g:
        if rows:
            head = flat[: rows * LANES]
            tail_sum = tail_sum + jnp.sum(jnp.maximum(head, 0).astype(jnp.float32))
        return tail_sum.astype(out_dtype).reshape(1)

    main = flat if rem == 0 else flat[: rows * LANES]
    x2d = main.reshape(rows, LANES)

    n_chunks_hw, max_block_bytes, vmem_limit = _chip_config()
    if _max_block_bytes is not None:      # test hook to force multi-block path
        max_block_bytes = _max_block_bytes

    # ---- Block sizing: tile `rows` (to the dtype's sublane quantum) so there
    # are no clamped duplicate blocks and at most the final block is masked.
    quantum = 64 if rows >= 64 else g        # 64 rows -> 8 f32 sub-accumulators
    row_bytes = LANES * itemsize
    max_block_rows = max(quantum, (max_block_bytes // row_bytes) // quantum * quantum)
    blocks_min = pl.cdiv(rows, max_block_rows)
    n_chunks = n_chunks_hw if rows >= n_chunks_hw * quantum else 1
    blocks_per_chunk = pl.cdiv(blocks_min, n_chunks)
    blocks_total = blocks_per_chunk * n_chunks
    block_rows = pl.cdiv(pl.cdiv(rows, blocks_total), quantum) * quantum
    need_mask = blocks_total * block_rows != rows     # keep this check exact
    last_block = pl.cdiv(rows, block_rows) - 1

    sub = 1
    for s in (8, 4, 2):
        if block_rows % (8 * s) == 0:
            sub = s
            break

    def in_map(c, i):
        # Clamp is a pure safety net: with the sizing above only the final
        # block can be partial, and its invalid rows are masked in-kernel.
        return (jnp.minimum(c * blocks_per_chunk + i, last_block), 0)

    kernel = functools.partial(
        _sum_relu_kernel,
        block_rows=block_rows,
        blocks_per_chunk=blocks_per_chunk,
        total_rows=rows,
        sub=sub,
        need_mask=need_mask,
    )

    partials = pl.pallas_call(
        kernel,
        out_shape=jax.ShapeDtypeStruct((n_chunks, sub, 8, LANES), jnp.float32),
        grid_spec=pltpu.PrefetchScalarGridSpec(
            num_scalar_prefetch=0,
            grid=(n_chunks, blocks_per_chunk),
            in_specs=[pl.BlockSpec((block_rows, LANES), in_map)],
            out_specs=pl.BlockSpec((None, sub, 8, LANES), lambda c, i: (c, 0, 0, 0)),
        ),
        compiler_params=pltpu.CompilerParams(
            dimension_semantics=("parallel", "arbitrary"),
            vmem_limit_bytes=vmem_limit,
        ),
    )(x2d)

    # Single cross-lane/sublane reduction over <= n_chunks * sub * 1024 floats.
    out = jnp.sum(partials) + tail_sum
    return out.astype(out_dtype).reshape(1)


if __name__ == "__main__":
    key = jax.random.PRNGKey(0)
    # Small NCHW input consistent with a conv-style model input.
    x = jax.random.normal(key, (2, 4, 16, 16), dtype=jnp.float32)

    result = toy_model_forward(x)
    jax.block_until_ready(result)
    ref = jnp.sum(jnp.maximum(x, 0.0)).reshape(1)
    assert result.shape == (1,)
    assert jnp.allclose(result, ref, rtol=1e-5, atol=1e-5), (result, ref)

    # Ragged shape: exercises the boundary-masked block + JAX tail path.
    x2 = jax.random.normal(jax.random.PRNGKey(1), (3, 5, 17, 19), jnp.float32)
    r2 = toy_model_forward(x2)
    jax.block_until_ready(r2)
    ref2 = jnp.sum(jnp.maximum(x2, 0.0)).reshape(1)
    assert jnp.allclose(r2, ref2, rtol=1e-5, atol=1e-4), (r2, ref2)

    # Multi-block streaming path: a small block cap forces several grid steps
    # with interior (unmasked) blocks plus one boundary-masked block.
    x3 = jax.random.normal(jax.random.PRNGKey(2), (2, 3, 7, 11, 13), jnp.float32)
    r3 = toy_model_forward(x3, _max_block_bytes=8 * 1024)
    jax.block_until_ready(r3)
    ref3 = jnp.sum(jnp.maximum(x3, 0.0)).reshape(1)
    assert jnp.allclose(r3, ref3, rtol=1e-5, atol=1e-4), (r3, ref3)

    print("KERNEL_OK")
</pallas_src>

<mosaic_0001>
module attributes {stable_mosaic.version = 11 : i64} {
  func.func @_sum_relu_kernel(%arg0: i32, %arg1: i32, %arg2: memref<16x128xf32, #tpu.memory_space<vmem>>, %arg3: memref<1x2x8x128xf32, #tpu.memory_space<vmem>>) attributes {dimension_semantics = [#tpu.dimension_semantics<parallel>, #tpu.dimension_semantics<arbitrary>], iteration_bounds = array<i64: 1, 1>, scalar_prefetch = 0 : i64, scratch_operands = 0 : i64, tpu.core_type = #tpu.core_type<tc>, window_params = [{transform_indices = @transform_0, window_bounds = array<i64: 16, 128>}, {transform_indices = @transform_1, window_bounds = array<i64: 1, 2, 8, 128>}]} {
    %c0_i32 = arith.constant 0 : i32
    %0 = arith.cmpi eq, %arg1, %c0_i32 : i32
    %1 = arith.extui %0 : i1 to i32
    %c0_i32_0 = arith.constant 0 : i32
    %2 = arith.cmpi ne, %1, %c0_i32_0 : i32
    scf.if %2 {
      %cst_11 = arith.constant 0.000000e+00 : f32
      %14 = vector.broadcast %cst_11 : f32 to vector<2x8x128xf32>
      %c0_12 = arith.constant 0 : index
      %c0_13 = arith.constant 0 : index
      %c0_14 = arith.constant 0 : index
      %c0_15 = arith.constant 0 : index
      %15 = vector.load %arg3[%c0_12, %c0_13, %c0_14, %c0_15] : memref<1x2x8x128xf32, #tpu.memory_space<vmem>>, vector<1x2x8x128xf32>
      %16 = vector.shape_cast %15 : vector<1x2x8x128xf32> to vector<2x8x128xf32>
      %17 = vector.shape_cast %14 : vector<2x8x128xf32> to vector<1x2x8x128xf32>
      tpu.vector_store %arg3[%c0_12, %c0_13, %c0_14, %c0_15], %17 {strides = array<i32>} : memref<1x2x8x128xf32, #tpu.memory_space<vmem>>, vector<1x2x8x128xf32>,
    } else {
    }
    %c0 = arith.constant 0 : index
    %c0_1 = arith.constant 0 : index
    %3 = vector.load %arg2[%c0, %c0_1] : memref<16x128xf32, #tpu.memory_space<vmem>>, vector<16x128xf32>
    %cst = arith.constant 0.000000e+00 : f32
    %4 = vector.broadcast %cst : f32 to vector<16x128xf32>
    %5 = arith.maximumf %3, %4 : vector<16x128xf32>
    %c0_2 = arith.constant 0 : index
    %c0_3 = arith.constant 0 : index
    %c0_4 = arith.constant 0 : index
    %c0_5 = arith.constant 0 : index
    %6 = vector.load %arg3[%c0_2, %c0_3, %c0_4, %c0_5] : memref<1x2x8x128xf32, #tpu.memory_space<vmem>>, vector<1x2x8x128xf32>
    %7 = vector.shape_cast %6 : vector<1x2x8x128xf32> to vector<2x8x128xf32>
    %8 = vector.shape_cast %5 : vector<16x128xf32> to vector<1x2x8x128xf32>
    %cst_6 = arith.constant dense<0.000000e+00> : vector<2x8x128xf32>
    %9 = vector.multi_reduction <add>, %8, %cst_6 [0] : vector<1x2x8x128xf32> to vector<2x8x128xf32>
    %10 = arith.addf %7, %9 : vector<2x8x128xf32>
    %c0_7 = arith.constant 0 : index
    %c0_8 = arith.constant 0 : index
    %c0_9 = arith.constant 0 : index
    %c0_10 = arith.constant 0 : index
    %11 = vector.load %arg3[%c0_7, %c0_8, %c0_9, %c0_10] : memref<1x2x8x128xf32, #tpu.memory_space<vmem>>, vector<1x2x8x128xf32>
    %12 = vector.shape_cast %11 : vector<1x2x8x128xf32> to vector<2x8x128xf32>
    %13 = vector.shape_cast %10 : vector<2x8x128xf32> to vector<1x2x8x128xf32>
    tpu.vector_store %arg3[%c0_7, %c0_8, %c0_9, %c0_10], %13 {strides = array<i32>} : memref<1x2x8x128xf32, #tpu.memory_space<vmem>>, vector<1x2x8x128xf32>,
    return
  }
  func.func @transform_0(%arg0: i32, %arg1: i32) -> (i32, i32) {
    %c1_i32 = arith.constant 1 : i32
    %0 = arith.muli %arg0, %c1_i32 : i32
    %1 = arith.addi %0, %arg1 : i32
    %c0_i32 = arith.constant 0 : i32
    %2 = arith.minsi %1, %c0_i32 : i32
    %c0_i32_0 = arith.constant 0 : i32
    %c0_i32_1 = arith.constant 0 : i32
    return %2, %c0_i32_0 : i32, i32
  }
  func.func @transform_1(%arg0: i32, %arg1: i32) -> (i32, i32, i32, i32) {
    %c0_i32 = arith.constant 0 : i32
    %c0_i32_0 = arith.constant 0 : i32
    %c0_i32_1 = arith.constant 0 : i32
    %c0_i32_2 = arith.constant 0 : i32
    return %arg0, %c0_i32, %c0_i32_0, %c0_i32_1 : i32, i32, i32, i32
  }
}

</mosaic_0001>

<bundles_post_ra>
// kernel: tpu_custom_call.1
= control target key start
LH: loop header
LB: loop body
LE: loop exit
PB: predicated region body
PF: predicated region fallthrough
CT: control target
= control target key end

     0   :  { %6 = vsyncpa [#allocation3], 0  ;;  %s151_s0 = inlined_call_operand.hbm [shape: f32[16,128], index: 0, kind: input, shape index: {}]   ;;  %s152_s1 = inlined_call_operand.hbm [shape: f32[1,2,8,128], index: 1, kind: output, shape index: {}]  }
   0x1   :  { %7 = vsyncpa [#allocation4], 0  ;;  %s18_s8 = sshll.u32 %s151_s0, 4  ;;  %s131_s9 = smov [#allocation2]   ;;  %s19_s8 = int_to_ptr.hbm [resolvable:$true] %s18_s8 }
   0x2   :  { %s20_s10 = sshll.u32 %s131_s9, 4  ;;  %s132_s11 = smov 128   ;;  %s21_s10 = int_to_ptr.vmem [resolvable:$true] %s20_s10 }
   0x3   :  { %s133_s12 = smov 8  }
   0x4   :  { %26 = dma.hbm_to_vmem [thread:$0]  %s19_s8, 256, %s21_s10, [#allocation3], %s132_s11, %s132_s11, %s133_s12  }
   0x5   :  { %127 = dma.done.wait [#allocation3], 256  }
   0x6   :  { %128 = vsyncadd [#allocation3], 4294967040  ;;  %v41_v0 = vld [vmem:[#allocation2] sm:$0xff]  ;;  %v42_v1 = vld [vmem:[#allocation2 + $0x8] sm:$0xff]  ;;  %s134_s13 = smov [#allocation5]   ;;  %s59_s17 = sshll.u32 %s152_s1, 4  ;;  %s60_s17 = int_to_ptr.hbm [resolvable:$true] %s59_s17 }
   0x7   :  { %v43_v2 = vmax.f32 %v41_v0, 0.0  ;;  %v44_v3 = vmax.f32 %v42_v1, 0.0  ;;  %s57_s14 = sshll.u32 %s134_s13, 4  ;;  %s58_s14 = int_to_ptr.vmem [resolvable:$true] %s57_s14 }
   0x9   :  { %51 = vst [vmem:[#allocation5] sm:$0xff] %v43_v2 }
   0xa   :  { %52 = vst [vmem:[#allocation5 + $0x8] sm:$0xff] %v44_v3 }
   0xb   :  { %65 = dma.vmem_to_hbm [thread:$0]  %s58_s14, 256, %s60_s17, [#allocation4], %s132_s11, %s132_s11, %s133_s12  }
   0xc   :  { %129 = dma.done.wait [#allocation4], 256  }
   0xd   :  { %130 = vsyncadd [#allocation4], 4294967040 }
   0xe   :  { %70 = vsyncpa [#allocation3], 1 }
   0xf   :  { %71 = vsyncpa [#allocation4], 1 }

</bundles_post_ra>
